<compile_context>
chip_gen: v6e
topology: v6e:2x2x1
jax: 0.10.0
libtpu: 0.0.40
codegen_flags: <defaults>
</compile_context>

<pallas_src>
import functools

import jax
import jax.numpy as jnp
from jax.experimental import pallas as pl
from jax.experimental.pallas import tpu as pltpu

IN_DIM, HID_DIM, OUT_DIM = 240, 120, 40   # logical (PyTorch) sizes
HID_PAD, OUT_PAD = 128, 128               # lane-padded weight sizes


def _cdiv(a, b):
    return (a + b - 1) // b


def _round_up(n, m):
    return ((n + m - 1) // m) * m


def mlp_kernel(x_ref, w1_ref, b1_ref, w2_ref, b2_ref, o_ref):
    # x_ref : [TB, 240] f32   (streamed per grid step)
    # w1_ref: [240, 128] bf16 (resident), b1_ref: [1, 128] f32 (resident)
    # w2_ref: [128, 128] bf16 (resident), b2_ref: [1, 128] f32 (resident)
    # o_ref : [TB, 40] f32    (streamed per grid step)
    x = x_ref[...].astype(jnp.bfloat16)                       # cast under DMA
    h = jnp.dot(x, w1_ref[...],
                preferred_element_type=jnp.float32)           # MXU, f32 acc
    h = jnp.tanh(h + b1_ref[...])                             # f32 VPU + EUP
    y = jnp.dot(h.astype(jnp.bfloat16), w2_ref[...],
                preferred_element_type=jnp.float32)           # MXU, f32 acc
    y = y + b2_ref[...]
    o_ref[...] = y[:, :OUT_DIM].astype(o_ref.dtype)           # 40-wide store


def pad_params(w1, b1, w2, b2):
    """One-time (init-time) lane padding + bf16 cast of the weights.

    Weights are stored [in, out] so the kernel computes x @ W + b (equivalent
    to PyTorch's x @ W_pt.T + b).  Padded rows/cols are zero, so the math is
    unchanged.
    """
    w1_p = jnp.zeros((IN_DIM, HID_PAD), jnp.bfloat16)
    w1_p = w1_p.at[:, :HID_DIM].set(w1.astype(jnp.bfloat16))
    b1_p = jnp.zeros((1, HID_PAD), jnp.float32)
    b1_p = b1_p.at[0, :HID_DIM].set(b1.reshape(-1).astype(jnp.float32))

    w2_p = jnp.zeros((HID_PAD, OUT_PAD), jnp.bfloat16)
    w2_p = w2_p.at[:HID_DIM, :OUT_DIM].set(w2.astype(jnp.bfloat16))
    b2_p = jnp.zeros((1, OUT_PAD), jnp.float32)
    b2_p = b2_p.at[0, :OUT_DIM].set(b2.reshape(-1).astype(jnp.float32))
    return w1_p, b1_p, w2_p, b2_p


@functools.partial(jax.jit, static_argnames=("tb_max",))
def baseline_mlp_forward(x, w1_p, b1_p, w2_p, b2_p, *, tb_max=1024):
    """x: [B, 240] f32; padded params from `pad_params`.  Returns [B, 40] f32."""
    B = x.shape[0]

    # Balanced batch tiling: even step count when >1 (v7x megacore balance),
    # TB a multiple of 8 (f32 sublane constraint), no batch over-padding.
    n_steps = _cdiv(B, tb_max)
    if n_steps > 1 and (n_steps % 2):
        n_steps += 1
    TB = _round_up(_cdiv(B, n_steps), 8)
    grid = (_cdiv(B, TB),)

    return pl.pallas_call(
        mlp_kernel,
        out_shape=jax.ShapeDtypeStruct((B, OUT_DIM), jnp.float32),
        grid=grid,
        in_specs=[
            pl.BlockSpec((TB, IN_DIM), lambda i: (i, 0)),        # streamed x
            pl.BlockSpec((IN_DIM, HID_PAD), lambda i: (0, 0)),   # resident W1
            pl.BlockSpec((1, HID_PAD), lambda i: (0, 0)),        # resident b1
            pl.BlockSpec((HID_PAD, OUT_PAD), lambda i: (0, 0)),  # resident W2
            pl.BlockSpec((1, OUT_PAD), lambda i: (0, 0)),        # resident b2
        ],
        out_specs=pl.BlockSpec((TB, OUT_DIM), lambda i: (i, 0)),
        compiler_params=pltpu.CompilerParams(
            dimension_semantics=("parallel",)),
    )(x.astype(jnp.float32), w1_p, b1_p, w2_p, b2_p)


def init_params(key):
    # Deterministic synthetic init (PyTorch-style uniform(-1/sqrt(fan_in), .)).
    k1, k2, k3, k4 = jax.random.split(key, 4)
    lim1 = 1.0 / jnp.sqrt(IN_DIM)
    lim2 = 1.0 / jnp.sqrt(HID_DIM)
    w1 = jax.random.uniform(k1, (IN_DIM, HID_DIM), jnp.float32, -lim1, lim1)
    b1 = jax.random.uniform(k2, (HID_DIM,), jnp.float32, -lim1, lim1)
    w2 = jax.random.uniform(k3, (HID_DIM, OUT_DIM), jnp.float32, -lim2, lim2)
    b2 = jax.random.uniform(k4, (OUT_DIM,), jnp.float32, -lim2, lim2)
    return w1, b1, w2, b2


def _reference(x, w1, b1, w2, b2):
    return jnp.tanh(x @ w1 + b1[None, :]) @ w2 + b2[None, :]


if __name__ == "__main__":
    key = jax.random.PRNGKey(0)
    k_x, k_x2, k_p = jax.random.split(key, 3)
    w1, b1, w2, b2 = init_params(k_p)
    w1_p, b1_p, w2_p, b2_p = pad_params(w1, b1, w2, b2)   # one-time padding

    # bf16 matmul inputs with f32 accumulation -> loosened tolerance vs f32 ref.
    TOL = dict(atol=3e-2, rtol=3e-2)

    # Small batch, not a multiple of 8 -> single grid step + boundary clipping.
    B_small = 12
    x_small = jax.random.normal(k_x, (B_small, IN_DIM), jnp.float32)
    out_small = jax.block_until_ready(
        baseline_mlp_forward(x_small, w1_p, b1_p, w2_p, b2_p))
    ref_small = _reference(x_small, w1, b1, w2, b2)
    assert out_small.shape == (B_small, OUT_DIM)
    assert jnp.allclose(out_small, ref_small, **TOL)

    # Multi-step grid (small tb_max forces several balanced batch tiles with a
    # clipped boundary block).
    B_big = 100
    x_big = jax.random.normal(k_x2, (B_big, IN_DIM), jnp.float32)
    out_big = jax.block_until_ready(
        baseline_mlp_forward(x_big, w1_p, b1_p, w2_p, b2_p, tb_max=40))
    ref_big = _reference(x_big, w1, b1, w2, b2)
    assert out_big.shape == (B_big, OUT_DIM)
    assert jnp.allclose(out_big, ref_big, **TOL)

    print("KERNEL_OK")
</pallas_src>

<mosaic_0001>
module attributes {stable_mosaic.version = 11 : i64} {
  func.func @mlp_kernel(%arg0: i32, %arg1: memref<16x240xf32, #tpu.memory_space<vmem>>, %arg2: memref<240x128xbf16, #tpu.memory_space<vmem>>, %arg3: memref<1x128xf32, #tpu.memory_space<vmem>>, %arg4: memref<128x128xbf16, #tpu.memory_space<vmem>>, %arg5: memref<1x128xf32, #tpu.memory_space<vmem>>, %arg6: memref<16x40xf32, #tpu.memory_space<vmem>>) attributes {dimension_semantics = [#tpu.dimension_semantics<parallel>], iteration_bounds = array<i64: 1>, scalar_prefetch = 0 : i64, scratch_operands = 0 : i64, tpu.core_type = #tpu.core_type<tc>, window_params = [{transform_indices = @transform_0, window_bounds = array<i64: 16, 240>}, {pipeline_mode = #tpu.pipeline_mode<synchronous>, transform_indices = @transform_1, window_bounds = array<i64: 240, 128>}, {pipeline_mode = #tpu.pipeline_mode<synchronous>, transform_indices = @transform_2, window_bounds = array<i64: 1, 128>}, {pipeline_mode = #tpu.pipeline_mode<synchronous>, transform_indices = @transform_3, window_bounds = array<i64: 128, 128>}, {pipeline_mode = #tpu.pipeline_mode<synchronous>, transform_indices = @transform_4, window_bounds = array<i64: 1, 128>}, {transform_indices = @transform_5, window_bounds = array<i64: 16, 40>}]} {
    %c0 = arith.constant 0 : index
    %c0_0 = arith.constant 0 : index
    %0 = vector.load %arg1[%c0, %c0_0] : memref<16x240xf32, #tpu.memory_space<vmem>>, vector<16x240xf32>
    %1 = arith.truncf %0 : vector<16x240xf32> to vector<16x240xbf16>
    %c0_1 = arith.constant 0 : index
    %c0_2 = arith.constant 0 : index
    %2 = vector.load %arg2[%c0_1, %c0_2] : memref<240x128xbf16, #tpu.memory_space<vmem>>, vector<240x128xbf16>
    %cst = arith.constant dense<0.000000e+00> : vector<16x128xf32>
    %3 = tpu.matmul %1, %2, %cst {dimension_numbers = #tpu.dot_dimension_numbers<[1], [0], [0], [1], [0, 0, 1, 1], [], []>} : vector<16x240xbf16>, vector<240x128xbf16>, vector<16x128xf32> -> vector<16x128xf32>
    %c0_3 = arith.constant 0 : index
    %c0_4 = arith.constant 0 : index
    %4 = vector.load %arg3[%c0_3, %c0_4] : memref<1x128xf32, #tpu.memory_space<vmem>>, vector<1x128xf32>
    %5 = vector.broadcast %4 : vector<1x128xf32> to vector<16x128xf32>
    %6 = arith.addf %3, %5 : vector<16x128xf32>
    %7 = math.tanh %6 : vector<16x128xf32>
    %8 = arith.truncf %7 : vector<16x128xf32> to vector<16x128xbf16>
    %c0_5 = arith.constant 0 : index
    %c0_6 = arith.constant 0 : index
    %9 = vector.load %arg4[%c0_5, %c0_6] : memref<128x128xbf16, #tpu.memory_space<vmem>>, vector<128x128xbf16>
    %cst_7 = arith.constant dense<0.000000e+00> : vector<16x128xf32>
    %10 = tpu.matmul %8, %9, %cst_7 {dimension_numbers = #tpu.dot_dimension_numbers<[1], [0], [0], [1], [0, 0, 1, 1], [], []>} : vector<16x128xbf16>, vector<128x128xbf16>, vector<16x128xf32> -> vector<16x128xf32>
    %c0_8 = arith.constant 0 : index
    %c0_9 = arith.constant 0 : index
    %11 = vector.load %arg5[%c0_8, %c0_9] : memref<1x128xf32, #tpu.memory_space<vmem>>, vector<1x128xf32>
    %12 = vector.broadcast %11 : vector<1x128xf32> to vector<16x128xf32>
    %13 = arith.addf %10, %12 : vector<16x128xf32>
    %14 = vector.extract_strided_slice %13 {offsets = [0, 0], sizes = [16, 40], strides = [1, 1]} : vector<16x128xf32> to vector<16x40xf32>
    %c0_10 = arith.constant 0 : index
    %c0_11 = arith.constant 0 : index
    %15 = vector.load %arg6[%c0_10, %c0_11] : memref<16x40xf32, #tpu.memory_space<vmem>>, vector<16x40xf32>
    tpu.vector_store %arg6[%c0_10, %c0_11], %14 {strides = array<i32>} : memref<16x40xf32, #tpu.memory_space<vmem>>, vector<16x40xf32>,
    return
  }
  func.func @transform_0(%arg0: i32) -> (i32, i32) {
    %c0_i32 = arith.constant 0 : i32
    %c0_i32_0 = arith.constant 0 : i32
    return %arg0, %c0_i32 : i32, i32
  }
  func.func @transform_1(%arg0: i32) -> (i32, i32) {
    %c0_i32 = arith.constant 0 : i32
    %c0_i32_0 = arith.constant 0 : i32
    %c0_i32_1 = arith.constant 0 : i32
    return %c0_i32, %c0_i32_0 : i32, i32
  }
  func.func @transform_2(%arg0: i32) -> (i32, i32) {
    %c0_i32 = arith.constant 0 : i32
    %c0_i32_0 = arith.constant 0 : i32
    %c0_i32_1 = arith.constant 0 : i32
    return %c0_i32, %c0_i32_0 : i32, i32
  }
  func.func @transform_3(%arg0: i32) -> (i32, i32) {
    %c0_i32 = arith.constant 0 : i32
    %c0_i32_0 = arith.constant 0 : i32
    %c0_i32_1 = arith.constant 0 : i32
    return %c0_i32, %c0_i32_0 : i32, i32
  }
  func.func @transform_4(%arg0: i32) -> (i32, i32) {
    %c0_i32 = arith.constant 0 : i32
    %c0_i32_0 = arith.constant 0 : i32
    %c0_i32_1 = arith.constant 0 : i32
    return %c0_i32, %c0_i32_0 : i32, i32
  }
  func.func @transform_5(%arg0: i32) -> (i32, i32) {
    %c0_i32 = arith.constant 0 : i32
    %c0_i32_0 = arith.constant 0 : i32
    return %arg0, %c0_i32 : i32, i32
  }
}

</mosaic_0001>

<bundles_post_ra>
// kernel: baseline_mlp_forward.1
= control target key start
LH: loop header
LB: loop body
LE: loop exit
PB: predicated region body
PF: predicated region fallthrough
CT: control target
= control target key end

     0   :  { %10 = vsyncpa [#allocation3], 0  ;;  %s628_s0 = inlined_call_operand.hbm [shape: f32[12,240], index: 0, kind: input, shape index: {}]   ;;  %s629_s1 = inlined_call_operand.hbm [shape: bf16[240,128], index: 1, kind: input, shape index: {}]   ;;  %s630_s2 = inlined_call_operand.vmem [shape: f32[1,128], index: 2, kind: input, shape index: {}]   ;;  %s631_s3 = inlined_call_operand.hbm [shape: bf16[128,128], index: 3, kind: input, shape index: {}]   ;;  %s632_s4 = inlined_call_operand.vmem [shape: f32[1,128], index: 4, kind: input, shape index: {}]   ;;  %s633_s5 = inlined_call_operand.hbm [shape: f32[12,40], index: 5, kind: output, shape index: {}]  }
   0x1   :  { %11 = vsyncpa [#allocation6], 0 }
   0x2   :  { %12 = vsyncpa [#allocation4], 0  ;;  %s558_s18 = smov [#allocation5]  }
   0x3   :  { %s30_s19 = sshll.u32 %s558_s18, 4  ;;  %s31_s19 = int_to_ptr.vmem [resolvable:$true] %s30_s19 }
   0x4   :  { %s480_s20 = scalar_lea.vmem %s31_s19, 1920  ;;  %p485_p1 = scmp.lt.s32.totalorder %s31_s19, %s31_s19 }
   0x5   :  { %p481_p0 = scmp.ne.s32.totalorder %s31_s19, %s480_s20  ;;  %p486_p2 = scmp.lt.s32.totalorder %s480_s20, %s480_s20 }
   0x7   :  { %p487_p3 = por %p486_p2, %p485_p1 }
   0x9   :  { %p488_p4 = pnand %p487_p3, %p481_p0 }
   0xb   :  { %491 = shalt.err (!%p488_p4)
}
   0xc   :  { %s559_s21 = smov 64   ;;  %s560_s22 = smov 4  }
   0xd   :  { %36 = dma.hbm_to_vmem [thread:$0]  %s629_s1, 1920, %s31_s19, [#allocation6], %s559_s21, %s559_s21, %s560_s22  }
   0xe   :  { %s561_s25 = smov [#allocation2]  }
   0xf   :  { %s18_s26 = sshll.u32 %s561_s25, 4  ;;  %s19_s26 = int_to_ptr.vmem [resolvable:$true] %s18_s26 }
  0x10   :  { %s500_s27 = scalar_lea.vmem %s19_s26, 512  ;;  %p505_p6 = scmp.lt.s32.totalorder %s19_s26, %s19_s26 }
  0x11   :  { %p501_p5 = scmp.ne.s32.totalorder %s19_s26, %s500_s27  ;;  %p506_p7 = scmp.lt.s32.totalorder %s500_s27, %s500_s27 }
  0x13   :  { %p507_p8 = por %p506_p7, %p505_p6 }
  0x15   :  { %p508_p9 = pnand %p507_p8, %p501_p5 }
  0x17   :  { %511 = shalt.err (!%p508_p9)
}
  0x18   :  { %s562_s28 = smov 256   ;;  %s563_s29 = smov 16  }
  0x19   :  { %24 = dma.hbm_to_vmem [thread:$0]  %s628_s0, 512, %s19_s26, [#allocation3], %s562_s28, %s562_s28, %s563_s29  }
  0x1a   :  { %s564_s7 = smov [#allocation7]  }
  0x1b   :  { %s44_s8 = sshll.u32 %s564_s7, 4  ;;  %s45_s8 = int_to_ptr.vmem [resolvable:$true] %s44_s8 }
  0x1c   :  { %s520_s1 = scalar_lea.vmem %s45_s8, 1024  ;;  %p525_p11 = scmp.lt.s32.totalorder %s45_s8, %s45_s8 }
  0x1d   :  { %p521_p10 = scmp.ne.s32.totalorder %s45_s8, %s520_s1  ;;  %p526_p12 = scmp.lt.s32.totalorder %s520_s1, %s520_s1 }
  0x1f   :  { %p527_p13 = por %p526_p12, %p525_p11 }
  0x21   :  { %p528_p0 = pnand %p527_p13, %p521_p10 }
  0x23   :  { %531 = shalt.err (!%p528_p0)
}
  0x24   :  { %50 = dma.hbm_to_vmem [thread:$0]  %s631_s3, 1024, %s45_s8, [#allocation6], %s559_s21, %s559_s21, %s560_s22  }
  0x25   :  { %552 = dma.done.wait [#allocation3], 512  }
  0x26   :  { %553 = vsyncadd [#allocation3], 4294966784 }
  0x27   :  { %554 = dma.done.wait [#allocation6], 2944  }
  0x28   :  { %555 = vsyncadd [#allocation6], 4294964352  ;;  %v565_v0 = vmov 0   ;;  %v566_v1 = vmov 0.0   ;;  %v445_v2 = vld [vmem:[#allocation5 + $0x38] sm:$0xff]   ;;  %v446_v3 = vld [vmem:[#allocation5 + $0x30] sm:$0xff]  }
  0x29   :  { %200 = vmatprep.subr.bf16.mxu0 %v565_v0  ;;  %412 = vmatprep.subr.bf16.mxu1 %v566_v1  ;;  %v447_v4 = vld [vmem:[#allocation5 + $0x28] sm:$0xff]   ;;  %v448_v5 = vld [vmem:[#allocation5 + $0x20] sm:$0xff]   ;;  %v449_v6 = vld [vmem:[#allocation5 + $0x18] sm:$0xff]   ;;  %vm196_vm0 = vcmask 916480   ;;  %vm567_vm1 = vmmov 0   ;;  %vm356_vm2 = vcmask 326656  }
  0x2a   :  { %201 = vmatpush1.bf16.msra.mxu0 %v445_v2  ;;  %v64_v7 = vld [vmem:[#allocation2 + $0x8] sm:$0xff]  ;;  %v66_v8 = vld [vmem:[#allocation2 + $0x18] sm:$0xff]  ;;  %v460_v10 = vld [vmem:[#allocation7 + $0x38] sm:$0xff]   ;;  %428 = vmatprep.mubr.msk.bf16.mxu1 %vm567_vm1, %v566_v1 }
  0x2b   :  { %202 = vmatprep.subr.bf16.mxu0 %v565_v0  ;;  %v68_v9 = vpack.c.bf16 %v66_v8, %v64_v7  ;;  %v450_v11 = vld [vmem:[#allocation5 + $0x10] sm:$0xff]   ;;  %v461_v12 = vld [vmem:[#allocation7 + $0x30] sm:$0xff]   ;;  %413 = vmatpush3.bf16.msra.mxu1 %v460_v10  ;;  %v452_v14 = vld [vmem:[#allocation5] sm:$0xff]  }
  0x2c   :  { %414 = vmatprep.subr.bf16.mxu1 %v566_v1  ;;  %v451_v13 = vld [vmem:[#allocation5 + $0x8] sm:$0xff]   ;;  %v453_v15 = vld [vmem:[#allocation5 + $0x70] sm:$0xff]   ;;  %v455_v17 = vld [vmem:[#allocation5 + $0x60] sm:$0xff]  }
  0x2d   :  { %393 = vmatprep.mubr.msk.bf16.mxu0 %vm196_vm0, %v68_v9  ;;  %v454_v16 = vld [vmem:[#allocation5 + $0x68] sm:$0xff]   ;;  %v456_v18 = vld [vmem:[#allocation5 + $0x58] sm:$0xff]   ;;  %v457_v19 = vld [vmem:[#allocation5 + $0x50] sm:$0xff]  }
  0x2e   :  { %203 = vmatpush1.bf16.msra.mxu0 %v446_v3  ;;  %v458_v20 = vld [vmem:[#allocation5 + $0x48] sm:$0xff]   ;;  %v459_v21 = vld [vmem:[#allocation5 + $0x40] sm:$0xff]   ;;  %v65_v23 = vld [vmem:[#allocation2 + $0x10] sm:$0xff] }
  0x2f   :  { %204 = vmatprep.subr.bf16.mxu0 %v565_v0  ;;  %415 = vmatpush3.bf16.msra.mxu1 %v461_v12  ;;  %v63_v22 = vld [vmem:[#allocation2] sm:$0xff]  ;;  %v463_v26 = vld [vmem:[#allocation7 + $0x20] sm:$0xff]   ;;  %v464_v27 = vld [vmem:[#allocation7 + $0x18] sm:$0xff]  }
  0x30   :  { %416 = vmatprep.subr.bf16.mxu1 %v566_v1  ;;  %v67_v24 = vpack.c.bf16 %v65_v23, %v63_v22  ;;  %v462_v25 = vld [vmem:[#allocation7 + $0x28] sm:$0xff]   ;;  %v465_v28 = vld [vmem:[#allocation7 + $0x10] sm:$0xff]   ;;  %v467_v30 = vld [vmem:[#allocation7] sm:$0xff]  }
  0x31   :  { %v466_v29 = vld [vmem:[#allocation7 + $0x8] sm:$0xff]  }
  0x32   :  { %205 = vmatpush1.bf16.msra.mxu0 %v447_v4  ;;  %v377_v31 = vld [vmem:[%s630_s2] ss:$0 sm:$0xff]  ;;  %s568_s2 = smov [#allocation8]  }
  0x33   :  { %206 = vmatprep.subr.bf16.mxu0 %v565_v0  ;;  %417 = vmatpush3.bf16.msra.mxu1 %v462_v25  ;;  %v394_v41 = vld [vmem:[%s632_s4] ss:$0 sm:$0xff]  ;;  %s364_s13 = sshll.u32 %s568_s2, 4  ;;  %s365_s13 = int_to_ptr.vmem [resolvable:$true] %s364_s13 }
  0x34   :  { %418 = vmatprep.subr.bf16.mxu1 %v566_v1  ;;  %s532_s14 = scalar_lea.vmem %s365_s13, 256  ;;  %p537_p2 = scmp.lt.s32.totalorder %s365_s13, %s365_s13 }
  0x35   :  { %p533_p1 = scmp.ne.s32.totalorder %s365_s13, %s532_s14  ;;  %p538_p3 = scmp.lt.s32.totalorder %s532_s14, %s532_s14 }
  0x36   :  { %207 = vmatpush1.bf16.msra.mxu0 %v448_v5 }
  0x37   :  { %208 = vmatprep.subr.bf16.mxu0 %v565_v0  ;;  %419 = vmatpush3.bf16.msra.mxu1 %v463_v26  ;;  %p539_p4 = por %p538_p3, %p537_p2 }
  0x38   :  { %420 = vmatprep.subr.bf16.mxu1 %v566_v1 }
  0x39   :  { %p540_p5 = pnand %p539_p4, %p533_p1 }
  0x3a   :  { %209 = vmatpush1.bf16.msra.mxu0 %v449_v6 }
  0x3b   :  { %210 = vmatprep.subr.bf16.mxu0 %v565_v0  ;;  %421 = vmatpush3.bf16.msra.mxu1 %v464_v27 }
  0x3c   :  { %422 = vmatprep.subr.bf16.mxu1 %v566_v1 }
  0x3e   :  { %211 = vmatpush1.bf16.msra.mxu0 %v450_v11 }
  0x3f   :  { %212 = vmatprep.subr.bf16.mxu0 %v565_v0  ;;  %423 = vmatpush3.bf16.msra.mxu1 %v465_v28 }
  0x40   :  { %424 = vmatprep.subr.bf16.mxu1 %v566_v1 }
  0x42   :  { %213 = vmatpush1.bf16.msra.mxu0 %v451_v13 }
  0x43   :  { %214 = vmatprep.subr.bf16.mxu0 %v565_v0  ;;  %425 = vmatpush3.bf16.msra.mxu1 %v466_v29 }
  0x44   :  { %426 = vmatprep.subr.bf16.mxu1 %v566_v1 }
  0x46   :  { %215 = vmatpush1.bf16.msra.mxu0 %v452_v14 }
  0x47   :  { %218 = vmatprep.subr.bf16.mxu0 %v565_v0  ;;  %427 = vmatpush3.bf16.msra.mxu1 %v467_v30 }
  0x4a   :  { %219 = vmatpush2.bf16.msra.mxu0 %v453_v15 }
  0x4b   :  { %220 = vmatprep.subr.bf16.mxu0 %v565_v0 }
  0x4e   :  { %221 = vmatpush2.bf16.msra.mxu0 %v454_v16 }
  0x4f   :  { %222 = vmatprep.subr.bf16.mxu0 %v565_v0 }
  0x52   :  { %223 = vmatpush2.bf16.msra.mxu0 %v455_v17 }
  0x53   :  { %224 = vmatprep.subr.bf16.mxu0 %v565_v0 }
  0x56   :  { %225 = vmatpush2.bf16.msra.mxu0 %v456_v18 }
  0x57   :  { %226 = vmatprep.subr.bf16.mxu0 %v565_v0 }
  0x5a   :  { %227 = vmatpush2.bf16.msra.mxu0 %v457_v19 }
  0x5b   :  { %228 = vmatprep.subr.bf16.mxu0 %v565_v0 }
  0x5e   :  { %229 = vmatpush2.bf16.msra.mxu0 %v458_v20 }
  0x5f   :  { %230 = vmatprep.subr.bf16.mxu0 %v565_v0 }
  0x62   :  { %231 = vmatpush2.bf16.msra.mxu0 %v459_v21 }
  0x65   :  { %233 = vmatmul.mubr.bf16.vlgmr.msra.gmra.mxu0 %v67_v24 }
 0x125   :  { %v234_v32 = vpop.f32.mrf.mxu0 }
 0x126   :  { %v235_v33 = vadd.f32 %v377_v31, %v234_v32 }
 0x127   :  { %v236_v34 = vpop.f32.mrf.mxu0 }
 0x128   :  { %468 = vtanh.f32 %v235_v33 }
 0x129   :  { %v237_v35 = vpop.f32.mrf.mxu0 }
 0x12a   :  { %v238_v36 = vadd.f32 %v377_v31, %v237_v35 }
 0x12b   :  { %v239_v37 = vpop.f32.mrf.mxu0 }
 0x12c   :  { %470 = vtanh.f32 %v238_v36 }
 0x135   :  { %v469_v38 = vpop.eup %468 }
 0x139   :  { %v471_v39 = vpop.eup %470 }
 0x13a   :  { %v243_v40 = vpack.c.bf16 %v471_v39, %v469_v38 }
 0x13c   :  { %429 = vmatmul.mubr.bf16.vlgmr.msra.gmra.mxu1 %v243_v40 }
 0x1fc   :  { %v349_v42 = vpop.f32.mrf.mxu1 }
 0x1fd   :  { %v350_v43 = vadd.f32 %v394_v41, %v349_v42 }
 0x1fe   :  { %v430_v44 = vpop.f32.mrf.mxu1 }
 0x1ff   :  { %357 = vst.msk [vmem:[#allocation8] sm:$0xff] %vm356_vm2, %v350_v43 }
 0x200   :  { %v352_v45 = vpop.f32.mrf.mxu1 }
 0x201   :  { %v353_v46 = vadd.f32 %v394_v41, %v352_v45 }
 0x202   :  { %v431_v47 = vpop.f32.mrf.mxu1 }
 0x203   :  { %358 = vst.msk [vmem:[#allocation8 + $0x8] sm:$0xff] %vm356_vm2, %v353_v46 }
 0x204   :  { %543 = shalt.err (!%p540_p5)
}
 0x205   :  { %s569_s4 = smov 128   ;;  %s570_s15 = smov 8  }
 0x206   :  { %370 = dma.vmem_to_hbm [thread:$0]  %s365_s13, 256, %s633_s5, [#allocation4], %s569_s4, %s569_s4, %s570_s15  }
 0x207   :  { %556 = dma.done.wait [#allocation4], 256  }
 0x208   :  { %557 = vsyncadd [#allocation4], 4294967040 }
 0x209   :  { %374 = vsyncpa [#allocation3], 1 }
 0x20a   :  { %375 = vsyncpa [#allocation6], 1 }
 0x20b   :  { %376 = vsyncpa [#allocation4], 1 }

</bundles_post_ra>
